<compile_context>
chip_gen: v5e
topology: v5e:2x2
jax: 0.10.0
libtpu: 0.0.40
codegen_flags: <defaults>
</compile_context>

<pallas_src>
import jax
import jax.numpy as jnp
from jax.experimental import pallas as pl
from jax.experimental.pallas import tpu as pltpu

_SQRT_2_OVER_PI = 0.7978845608028654   # sqrt(2 / pi)
_SQRT_HALF = 0.7071067811865476        # 1 / sqrt(2)


# -------------------------- Pallas kernels ----------------------------------


def _gelu_tanh_kernel(x_ref, o_ref):
    # tanh approximation: 0.5 * x * (1 + tanh(sqrt(2/pi) * (x + 0.044715 x^3)))
    x = x_ref[...].astype(jnp.float32)
    inner = _SQRT_2_OVER_PI * (x + 0.044715 * (x * x * x))
    o_ref[...] = (0.5 * x * (1.0 + jnp.tanh(inner))).astype(o_ref.dtype)


def _gelu_exact_kernel(x_ref, o_ref):
    # exact (erf) form: 0.5 * x * (1 + erf(x / sqrt(2)))
    x = x_ref[...].astype(jnp.float32)
    o_ref[...] = (0.5 * x * (1.0 + jax.lax.erf(x * _SQRT_HALF))).astype(o_ref.dtype)


# -------------------------- wrapper ------------------------------------------


def gelu_pallas(x, approximate: str = "tanh", *, block_rows: int = 1024,
                lane_width: int = 512):
    """GELU forward, matching nn.functional.gelu(x, approximate=approximate).

    Any input shape is accepted; `.contiguous()` in the PyTorch reference is a
    no-op here (JAX arrays are already dense).
    """
    orig_shape = x.shape
    total = int(x.size)
    if total == 0:
        return x

    flat = x.reshape(-1)

    # Lane-dense layout: last dim a large multiple of 128 -> unmasked stores.
    lane = lane_width if total >= lane_width else 128

    rows = pl.cdiv(total, lane)
    rows = pl.cdiv(rows, 8) * 8               # sublane-align for (8, 128) tiling
    bm = min(block_rows, rows)
    rows = pl.cdiv(rows, bm) * bm             # integral number of grid blocks
    padded = rows * lane

    needs_pad = padded != total
    if needs_pad:
        flat = jnp.pad(flat, (0, padded - total))
    x2d = flat.reshape(rows, lane)

    kernel = _gelu_tanh_kernel if approximate == "tanh" else _gelu_exact_kernel

    out2d = pl.pallas_call(
        kernel,
        out_shape=jax.ShapeDtypeStruct((rows, lane), x.dtype),
        grid=(rows // bm,),
        in_specs=[pl.BlockSpec((bm, lane), lambda i: (i, 0))],
        out_specs=pl.BlockSpec((bm, lane), lambda i: (i, 0)),
        compiler_params=pltpu.CompilerParams(
            dimension_semantics=("parallel",),      # shardable across v7x TCs
            vmem_limit_bytes=32 * 1024 * 1024,      # safe on v7x's 64 MiB VMEM
        ),
    )(x2d)

    if needs_pad:
        return out2d.reshape(-1)[:total].reshape(orig_shape)
    return out2d.reshape(orig_shape)


# -------------------------- pure-JAX reference --------------------------------


def gelu_reference(x, approximate: str = "tanh"):
    xf = x.astype(jnp.float32)
    if approximate == "tanh":
        inner = _SQRT_2_OVER_PI * (xf + 0.044715 * (xf * xf * xf))
        out = 0.5 * xf * (1.0 + jnp.tanh(inner))
    else:
        out = 0.5 * xf * (1.0 + jax.lax.erf(xf * _SQRT_HALF))
    return out.astype(x.dtype)


# -------------------------- main ----------------------------------------------


if __name__ == "__main__":
    key = jax.random.PRNGKey(0)
    x = jax.random.normal(key, (2, 4, 16, 16), dtype=jnp.float32)

    # tanh approximation (module default)
    out = gelu_pallas(x, approximate="tanh")
    out = jax.block_until_ready(out)

    ref = gelu_reference(x, approximate="tanh")
    assert out.shape == x.shape
    assert jnp.allclose(out, ref, rtol=1e-5, atol=1e-5), "mismatch vs reference (tanh)"
    assert jnp.allclose(out, jax.nn.gelu(x, approximate=True),
                        rtol=1e-4, atol=1e-4), "mismatch vs jax.nn.gelu (tanh)"

    # exact (erf) variant, approximate='none'
    out_exact = jax.block_until_ready(gelu_pallas(x, approximate="none"))
    ref_exact = gelu_reference(x, approximate="none")
    assert jnp.allclose(out_exact, ref_exact, rtol=1e-5, atol=1e-5), \
        "mismatch vs reference (exact)"

    print("KERNEL_OK")
</pallas_src>

<mosaic_0001>
module attributes {stable_mosaic.version = 11 : i64} {
  func.func @_gelu_tanh_kernel(%arg0: i32, %arg1: memref<8x512xf32, #tpu.memory_space<vmem>>, %arg2: memref<8x512xf32, #tpu.memory_space<vmem>>) attributes {dimension_semantics = [#tpu.dimension_semantics<parallel>], iteration_bounds = array<i64: 1>, scalar_prefetch = 0 : i64, scratch_operands = 0 : i64, tpu.core_type = #tpu.core_type<tc>, window_params = [{transform_indices = @transform_0, window_bounds = array<i64: 8, 512>}, {transform_indices = @transform_1, window_bounds = array<i64: 8, 512>}]} {
    %c0 = arith.constant 0 : index
    %c0_0 = arith.constant 0 : index
    %0 = vector.load %arg1[%c0, %c0_0] : memref<8x512xf32, #tpu.memory_space<vmem>>, vector<8x512xf32>
    %1 = arith.mulf %0, %0 : vector<8x512xf32>
    %2 = arith.mulf %1, %0 : vector<8x512xf32>
    %cst = arith.constant 4.471500e-02 : f32
    %3 = vector.broadcast %cst : f32 to vector<8x512xf32>
    %4 = arith.mulf %3, %2 : vector<8x512xf32>
    %5 = arith.addf %0, %4 : vector<8x512xf32>
    %cst_1 = arith.constant 0.797884583 : f32
    %6 = vector.broadcast %cst_1 : f32 to vector<8x512xf32>
    %7 = arith.mulf %6, %5 : vector<8x512xf32>
    %cst_2 = arith.constant 5.000000e-01 : f32
    %8 = vector.broadcast %cst_2 : f32 to vector<8x512xf32>
    %9 = arith.mulf %8, %0 : vector<8x512xf32>
    %10 = math.tanh %7 : vector<8x512xf32>
    %cst_3 = arith.constant 1.000000e+00 : f32
    %11 = vector.broadcast %cst_3 : f32 to vector<8x512xf32>
    %12 = arith.addf %11, %10 : vector<8x512xf32>
    %13 = arith.mulf %9, %12 : vector<8x512xf32>
    %c0_4 = arith.constant 0 : index
    %c0_5 = arith.constant 0 : index
    %14 = vector.load %arg2[%c0_4, %c0_5] : memref<8x512xf32, #tpu.memory_space<vmem>>, vector<8x512xf32>
    tpu.vector_store %arg2[%c0_4, %c0_5], %13 {strides = array<i32>} : memref<8x512xf32, #tpu.memory_space<vmem>>, vector<8x512xf32>,
    return
  }
  func.func @transform_0(%arg0: i32) -> (i32, i32) {
    %c0_i32 = arith.constant 0 : i32
    %c0_i32_0 = arith.constant 0 : i32
    return %arg0, %c0_i32 : i32, i32
  }
  func.func @transform_1(%arg0: i32) -> (i32, i32) {
    %c0_i32 = arith.constant 0 : i32
    %c0_i32_0 = arith.constant 0 : i32
    return %arg0, %c0_i32 : i32, i32
  }
}

</mosaic_0001>

<bundles_post_ra>
// kernel: tpu_custom_call.1
= control target key start
LH: loop header
LB: loop body
LE: loop exit
PB: predicated region body
PF: predicated region fallthrough
CT: control target
= control target key end

     0   :  { %6 = vsyncpa [#allocation3], 0  ;;  %s164_s0 = inlined_call_operand.hbm [shape: f32[8,512], index: 0, kind: input, shape index: {}]   ;;  %s165_s1 = inlined_call_operand.hbm [shape: f32[8,512], index: 1, kind: output, shape index: {}]  }
   0x1   :  { %7 = vsyncpa [#allocation4], 0  ;;  %s13_s8 = sshll.u32 %s164_s0, 4  ;;  %s146_s9 = smov [#allocation2]   ;;  %s14_s8 = int_to_ptr.hbm [resolvable:$true] %s13_s8 }
   0x2   :  { %s15_s10 = sshll.u32 %s146_s9, 4  ;;  %s16_s10 = int_to_ptr.vmem [resolvable:$true] %s15_s10 }
   0x3   :  { %18 = dma.hbm_to_vmem [thread:$0]  %s14_s8, 512, %s16_s10, [#allocation3]  }
   0x4   :  { %142 = dma.done.wait [#allocation3], 512  }
   0x5   :  { %143 = vsyncadd [#allocation3], 4294966784  ;;  %v23_v0 = vld [vmem:[#allocation2] sm:$0xff]  ;;  %v24_v1 = vld [vmem:[#allocation2 + $0x8] sm:$0xff]  ;;  %s147_s0 = smov [#allocation5]   ;;  %s74_s14 = sshll.u32 %s165_s1, 4  ;;  %s75_s14 = int_to_ptr.hbm [resolvable:$true] %s74_s14 }
   0x6   :  { %v25_v2 = vld [vmem:[#allocation2 + $0x10] sm:$0xff]  ;;  %v27_v3 = vmul.f32 %v23_v0, %v23_v0  ;;  %v28_v4 = vmul.f32 %v24_v1, %v24_v1  ;;  %v26_v5 = vld [vmem:[#allocation2 + $0x18] sm:$0xff]  ;;  %v47_v24 = vmul.f32 0.5, %v23_v0  ;;  %v48_v26 = vmul.f32 0.5, %v24_v1  ;;  %s72_s11 = sshll.u32 %s147_s0, 4  ;;  %s73_s11 = int_to_ptr.vmem [resolvable:$true] %s72_s11 }
   0x7   :  { %v29_v6 = vmul.f32 %v25_v2, %v25_v2  ;;  %v30_v7 = vmul.f32 %v26_v5, %v26_v5  ;;  %v49_v29 = vmul.f32 0.5, %v25_v2  ;;  %v50_v32 = vmul.f32 0.5, %v26_v5 }
   0x8   :  { %v31_v8 = vmul.f32 %v27_v3, %v23_v0  ;;  %v32_v9 = vmul.f32 %v28_v4, %v24_v1 }
   0x9   :  { %v33_v10 = vmul.f32 %v29_v6, %v25_v2  ;;  %v34_v11 = vmul.f32 %v30_v7, %v26_v5 }
   0xa   :  { %v35_v12 = vmul.f32 0.044715, %v31_v8  ;;  %v36_v13 = vmul.f32 0.044715, %v32_v9 }
   0xb   :  { %v37_v14 = vmul.f32 0.044715, %v33_v10  ;;  %v38_v15 = vmul.f32 0.044715, %v34_v11 }
   0xc   :  { %v39_v16 = vadd.f32 %v35_v12, %v23_v0  ;;  %v40_v17 = vadd.f32 %v36_v13, %v24_v1 }
   0xd   :  { %v41_v18 = vadd.f32 %v37_v14, %v25_v2  ;;  %v42_v19 = vadd.f32 %v38_v15, %v26_v5 }
   0xe   :  { %v43_v20 = vmul.f32 0.7978846, %v39_v16  ;;  %v44_v21 = vmul.f32 0.7978846, %v40_v17 }
   0xf   :  { %v45_v22 = vmul.f32 0.7978846, %v41_v18  ;;  %v46_v23 = vmul.f32 0.7978846, %v42_v19 }
  0x10   :  { %86 = vtanh.f32 %v43_v20 }
  0x11   :  { %88 = vtanh.f32 %v44_v21 }
  0x12   :  { %90 = vtanh.f32 %v45_v22 }
  0x13   :  { %92 = vtanh.f32 %v46_v23 }
  0x16   :  { %v87_v25 = vpop.eup %86 }
  0x17   :  { %v89_v27 = vpop.eup %88  ;;  %v55_v28 = vadd.f32 1.0, %v87_v25 }
  0x18   :  { %v91_v30 = vpop.eup %90  ;;  %v56_v31 = vadd.f32 1.0, %v89_v27 }
  0x19   :  { %v93_v33 = vpop.eup %92  ;;  %v59_v34 = vmul.f32 %v55_v28, %v47_v24  ;;  %v57_v35 = vadd.f32 1.0, %v91_v30 }
  0x1a   :  { %v60_v36 = vmul.f32 %v56_v31, %v48_v26  ;;  %v58_v37 = vadd.f32 1.0, %v93_v33 }
  0x1b   :  { %63 = vst [vmem:[#allocation5] sm:$0xff] %v59_v34  ;;  %v61_v38 = vmul.f32 %v57_v35, %v49_v29 }
  0x1c   :  { %64 = vst [vmem:[#allocation5 + $0x8] sm:$0xff] %v60_v36  ;;  %v62_v39 = vmul.f32 %v58_v37, %v50_v32 }
  0x1d   :  { %65 = vst [vmem:[#allocation5 + $0x10] sm:$0xff] %v61_v38 }
  0x1e   :  { %66 = vst [vmem:[#allocation5 + $0x18] sm:$0xff] %v62_v39 }
  0x1f   :  { %77 = dma.vmem_to_hbm [thread:$0]  %s73_s11, 512, %s75_s14, [#allocation4]  }
  0x20   :  { %144 = dma.done.wait [#allocation4], 512  }
  0x21   :  { %145 = vsyncadd [#allocation4], 4294966784 }
  0x22   :  { %82 = vsyncpa [#allocation3], 1 }
  0x23   :  { %83 = vsyncpa [#allocation4], 1 }

</bundles_post_ra>
